<compile_context>
chip_gen: v7x
topology: tpu7x:2x2x1
jax: 0.10.0
libtpu: 0.0.40
codegen_flags: <defaults>
</compile_context>

<pallas_src>
import functools

import jax
import jax.numpy as jnp
from jax.experimental import pallas as pl
from jax.experimental.pallas import tpu as pltpu

UNMASKED_LABEL = -100.0  # NDT convention: labels == -100 are excluded from the loss
LANES = 128              # TPU lane width


def _round_up(x, m):
    return ((x + m - 1) // m) * m


def _detected_core_count():
    """Best-effort TensorCore count of the local chip (2 only on v7x)."""
    try:
        kind = jax.devices()[0].device_kind.lower()
    except Exception:
        return 1
    return 2 if "v7" in kind else 1


def _oracle_loss_kernel(rates_ref, labels_ref, sum_ref, cnt_ref, acc_sum, acc_cnt,
                        *, rows, tm, inner_steps, needs_mask):
    """Elementwise Poisson NLL + masked partial reduction.

    Grid = (shard, row_tile_step). Per step we accumulate per-lane partials into
    (8,128) VMEM accumulators (leading-axis-only vreg adds); lane-dense partials
    are written out once on the last inner step of each shard. Ragged / duplicate
    boundary tiles are neutralized with a row-index mask (select, so garbage
    exp() values never propagate).
    """
    c = pl.program_id(0)
    i = pl.program_id(1)

    @pl.when(i == 0)
    def _():
        acc_sum[...] = jnp.zeros_like(acc_sum)
        acc_cnt[...] = jnp.zeros_like(acc_cnt)

    r = rates_ref[...].astype(jnp.float32)
    y = labels_ref[...].astype(jnp.float32)

    # PoissonNLLLoss(log_input=True, full=False): exp(input) - target * input.
    # exp() lands on the EUP slot (free filler for a mem-bound kernel).
    loss = jnp.exp(r) - y * r
    mask = y != UNMASKED_LABEL

    def _accumulate(m):
        s = jnp.where(m, loss, 0.0)          # select (never mask*loss: drops inf/NaN tails)
        k = m.astype(jnp.float32)
        if tm % 8 == 0:
            # Reduce only the leading (vreg-count) axis: sublane-grouping reshape
            # + vreg-wise adds, no per-step cross-lane XLU reduce.
            acc_sum[...] += s.reshape(tm // 8, 8, LANES).sum(axis=0)
            acc_cnt[...] += k.reshape(tm // 8, 8, LANES).sum(axis=0)
        else:
            # Only reachable for a single full-extent block (tm == rows < 8 or
            # rows not a multiple of 8 with one block): one-off sublane reduce.
            acc_sum[0:1, :] += s.sum(axis=0, keepdims=True)
            acc_cnt[0:1, :] += k.sum(axis=0, keepdims=True)

    if needs_mask:
        row0 = (c * inner_steps + i) * tm

        @pl.when(row0 + tm <= rows)          # fast path: full, in-bounds tile
        def _():
            _accumulate(mask)

        @pl.when(row0 + tm > rows)           # boundary / duplicated tile
        def _():
            row_idx = row0 + jax.lax.broadcasted_iota(jnp.int32, (tm, LANES), 0)
            _accumulate(mask & (row_idx < rows))
    else:
        _accumulate(mask)

    @pl.when(i == pl.num_programs(1) - 1)
    def _():
        sum_ref[...] = acc_sum[...]
        cnt_ref[...] = acc_cnt[...]


def rates_oracle_forward(rates, mask_labels, *, row_tile=8192, num_shards=None,
                         core_parallel=None):
    """JAX/Pallas equivalent of RatesOracle.forward.

    rates, mask_labels: (batch, seq, num_neurons); labels may be f32/bf16/int.
    Returns the same 6-tuple structure as the torch module:
    (loss[1], rates, None, 0.0, None, None).

    NOTE: if every label equals UNMASKED_LABEL the count is 0 and the loss is
    NaN, matching PyTorch's mean() over an empty selection.
    """
    if num_shards is None:
        num_shards = _detected_core_count()
    if core_parallel is None:
        core_parallel = _detected_core_count() > 1
    num_shards = max(1, int(num_shards))

    total = int(rates.size)
    rates_flat = jnp.ravel(rates)
    labels_flat = jnp.ravel(mask_labels)

    rem = total % LANES
    rows = total // LANES
    main_total = rows * LANES

    # ---- <128-element ragged residual: tiny, plain JAX (no big pad/copy). ----
    if rem:
        tr = rates_flat[main_total:].astype(jnp.float32)
        ty = labels_flat[main_total:].astype(jnp.float32)
        tl = jnp.exp(tr) - ty * tr
        tmsk = ty != UNMASKED_LABEL
        tail_sum = jnp.sum(jnp.where(tmsk, tl, 0.0))
        tail_cnt = jnp.sum(tmsk.astype(jnp.float32))
    else:
        tail_sum = jnp.float32(0.0)
        tail_cnt = jnp.float32(0.0)

    zero = jnp.zeros((), jnp.float32)

    if rows == 0:
        masked_loss = (tail_sum / tail_cnt).reshape(1)
        return (masked_loss, rates, None, zero, None, None)

    # ---- Lane-dense slab: zero-copy reshape when total % 128 == 0. ----
    # TODO(synk): for unaligned totals the prefix slice below may still copy once;
    # callers should prefer shapes with (B*T*N) % 128 == 0.
    r2d = (rates_flat if rem == 0 else rates_flat[:main_total]).reshape(rows, LANES)
    y2d = (labels_flat if rem == 0 else labels_flat[:main_total]).reshape(rows, LANES)

    # ---- Tiling: tm is a multiple of 8, or exactly the full slab extent. ----
    row_tile = max(8, int(row_tile))
    tm = min(_round_up(row_tile, 8), _round_up(-(-rows // num_shards), 8))
    if tm >= rows:
        tm = rows            # single full-extent block (legal: equals full dim)
        num_shards = 1
    num_blocks = -(-rows // tm)
    num_shards = min(num_shards, num_blocks)
    inner_steps = -(-num_blocks // num_shards)
    covered_rows = num_shards * inner_steps * tm
    needs_mask = covered_rows != rows

    # Clamp logical block indices so no DMA ever starts fully out of bounds
    # (duplicated boundary blocks are zeroed by the in-kernel row mask).
    in_index_map = lambda c, i: (jnp.minimum(c * inner_steps + i, num_blocks - 1), 0)
    out_index_map = lambda c, i: (c, 0)

    kernel = functools.partial(_oracle_loss_kernel, rows=rows, tm=tm,
                               inner_steps=inner_steps, needs_mask=needs_mask)

    # VMEM budget: 2 inputs x 2 pipeline buffers x (tm,128) + small outputs/scratch.
    per_step_in_bytes = tm * LANES * (r2d.dtype.itemsize + y2d.dtype.itemsize)
    vmem_limit = int(min(48 << 20, max(2 * per_step_in_bytes + (4 << 20), 16 << 20)))

    shard_sem = "parallel"
    if core_parallel and num_shards > 1:
        shard_sem = getattr(pltpu, "CORE_PARALLEL", "parallel")   # both v7x TCs

    cost = pl.CostEstimate(
        flops=5 * main_total,
        transcendentals=main_total,
        bytes_accessed=main_total * (r2d.dtype.itemsize + y2d.dtype.itemsize)
        + 2 * num_shards * 8 * LANES * 4,
    )

    sum_out, cnt_out = pl.pallas_call(
        kernel,
        out_shape=(
            jax.ShapeDtypeStruct((num_shards * 8, LANES), jnp.float32),
            jax.ShapeDtypeStruct((num_shards * 8, LANES), jnp.float32),
        ),
        grid_spec=pltpu.PrefetchScalarGridSpec(
            num_scalar_prefetch=0,
            grid=(num_shards, inner_steps),
            in_specs=[
                pl.BlockSpec((tm, LANES), in_index_map),
                pl.BlockSpec((tm, LANES), in_index_map),
            ],
            out_specs=[
                pl.BlockSpec((8, LANES), out_index_map),
                pl.BlockSpec((8, LANES), out_index_map),
            ],
            scratch_shapes=[
                pltpu.VMEM((8, LANES), jnp.float32),
                pltpu.VMEM((8, LANES), jnp.float32),
            ],
        ),
        compiler_params=pltpu.CompilerParams(
            dimension_semantics=(shard_sem, "arbitrary"),
            vmem_limit_bytes=vmem_limit,
        ),
        cost_estimate=cost,
    )(r2d, y2d)

    # Tiny final cross-lane reduce + division in plain XLA.
    masked_loss = ((jnp.sum(sum_out) + tail_sum)
                   / (jnp.sum(cnt_out) + tail_cnt)).reshape(1)
    # Mirror torch return tuple: (loss[1], rates, None, 0.0, None, None)
    return (masked_loss, rates, None, zero, None, None)


def _reference_forward(rates, mask_labels):
    """Pure-JAX reference for correctness checking."""
    r = rates.astype(jnp.float32)
    y = mask_labels.astype(jnp.float32)
    loss = jnp.exp(r) - y * r
    mask = y != UNMASKED_LABEL
    return jnp.sum(jnp.where(mask, loss, 0.0)) / jnp.sum(mask)


def _make_inputs(key, shape):
    k1, k2, k3 = jax.random.split(key, 3)
    # "rates" are log-rates (LOGRATE=True), small values.
    rates = jax.random.normal(k1, shape, dtype=jnp.float32) * 0.5
    # labels: Poisson-ish integer spike counts as float targets.
    counts = jax.random.randint(k2, shape, 0, 5).astype(jnp.float32)
    # Randomly mark ~50% of positions as UNMASKED (excluded from loss).
    unmasked = jax.random.bernoulli(k3, 0.5, shape)
    mask_labels = jnp.where(unmasked, jnp.float32(UNMASKED_LABEL), counts)
    return rates, mask_labels


if __name__ == "__main__":
    key = jax.random.PRNGKey(0)
    ks = jax.random.split(key, 4)

    # Case 1: module-scale shapes (batch=2, seq=8, num_neurons=32) -> 512 elems,
    # single full-extent (4,128) block.
    rates, labels = _make_inputs(ks[0], (2, 8, 32))
    out = rates_oracle_forward(rates, labels)
    loss = jax.block_until_ready(out[0])
    ref = jax.block_until_ready(_reference_forward(rates, labels))
    assert jnp.allclose(loss[0], ref, rtol=1e-5, atol=1e-5), (loss, ref)
    assert out[1].shape == rates.shape
    assert float(out[3]) == 0.0

    # Case 2: multi-shard, multi-step accumulation with ragged/duplicated boundary
    # tiles, and labels carried as bf16 (sentinel -100 and counts exact in bf16).
    rates2, labels2 = _make_inputs(ks[1], (4, 16, 48))
    labels2 = labels2.astype(jnp.bfloat16)
    out2 = rates_oracle_forward(rates2, labels2, row_tile=8, num_shards=2)
    loss2 = jax.block_until_ready(out2[0])
    ref2 = jax.block_until_ready(_reference_forward(rates2, labels2))
    assert jnp.allclose(loss2[0], ref2, rtol=1e-5, atol=1e-5), (loss2, ref2)

    # Case 3: total not a multiple of 128 -> exercises the <128-element residual path.
    rates3, labels3 = _make_inputs(ks[2], (2, 8, 33))
    out3 = rates_oracle_forward(rates3, labels3)
    loss3 = jax.block_until_ready(out3[0])
    ref3 = jax.block_until_ready(_reference_forward(rates3, labels3))
    assert jnp.allclose(loss3[0], ref3, rtol=1e-5, atol=1e-5), (loss3, ref3)

    # Case 4: exactly-tiled multi-block grid (no masking branch generated).
    rates4, labels4 = _make_inputs(ks[3], (8, 16, 64))
    out4 = rates_oracle_forward(rates4, labels4, row_tile=16, num_shards=2)
    loss4 = jax.block_until_ready(out4[0])
    ref4 = jax.block_until_ready(_reference_forward(rates4, labels4))
    assert jnp.allclose(loss4[0], ref4, rtol=1e-5, atol=1e-5), (loss4, ref4)

    print("KERNEL_OK")
</pallas_src>

<mosaic_0001>
module attributes {stable_mosaic.version = 11 : i64} {
  func.func @_oracle_loss_kernel(%arg0: i32, %arg1: i32, %arg2: memref<4x128xf32, #tpu.memory_space<vmem>>, %arg3: memref<4x128xf32, #tpu.memory_space<vmem>>, %arg4: memref<8x128xf32, #tpu.memory_space<vmem>>, %arg5: memref<8x128xf32, #tpu.memory_space<vmem>>, %arg6: memref<8x128xf32, #tpu.memory_space<vmem>>, %arg7: memref<8x128xf32, #tpu.memory_space<vmem>>) attributes {dimension_semantics = [#tpu.dimension_semantics<parallel>, #tpu.dimension_semantics<arbitrary>], iteration_bounds = array<i64: 1, 1>, scalar_prefetch = 0 : i64, scratch_operands = 2 : i64, tpu.core_type = #tpu.core_type<tc>, window_params = [{transform_indices = @transform_0, window_bounds = array<i64: 4, 128>}, {transform_indices = @transform_1, window_bounds = array<i64: 4, 128>}, {transform_indices = @transform_2, window_bounds = array<i64: 8, 128>}, {transform_indices = @transform_3, window_bounds = array<i64: 8, 128>}]} {
    %c0_i32 = arith.constant 0 : i32
    %0 = arith.cmpi eq, %arg1, %c0_i32 : i32
    %1 = arith.extui %0 : i1 to i32
    %c0_i32_0 = arith.constant 0 : i32
    %2 = arith.cmpi ne, %1, %c0_i32_0 : i32
    scf.if %2 {
      %cst_17 = arith.constant 0.000000e+00 : f32
      %27 = vector.broadcast %cst_17 : f32 to vector<8x128xf32>
      %c0_18 = arith.constant 0 : index
      %c0_19 = arith.constant 0 : index
      %28 = vector.load %arg6[%c0_18, %c0_19] : memref<8x128xf32, #tpu.memory_space<vmem>>, vector<8x128xf32>
      tpu.vector_store %arg6[%c0_18, %c0_19], %27 {strides = array<i32>} : memref<8x128xf32, #tpu.memory_space<vmem>>, vector<8x128xf32>,
      %cst_20 = arith.constant 0.000000e+00 : f32
      %29 = vector.broadcast %cst_20 : f32 to vector<8x128xf32>
      %c0_21 = arith.constant 0 : index
      %c0_22 = arith.constant 0 : index
      %30 = vector.load %arg7[%c0_21, %c0_22] : memref<8x128xf32, #tpu.memory_space<vmem>>, vector<8x128xf32>
      tpu.vector_store %arg7[%c0_21, %c0_22], %29 {strides = array<i32>} : memref<8x128xf32, #tpu.memory_space<vmem>>, vector<8x128xf32>,
    } else {
    }
    %c0 = arith.constant 0 : index
    %c0_1 = arith.constant 0 : index
    %3 = vector.load %arg2[%c0, %c0_1] : memref<4x128xf32, #tpu.memory_space<vmem>>, vector<4x128xf32>
    %c0_2 = arith.constant 0 : index
    %c0_3 = arith.constant 0 : index
    %4 = vector.load %arg3[%c0_2, %c0_3] : memref<4x128xf32, #tpu.memory_space<vmem>>, vector<4x128xf32>
    %5 = math.exp %3 : vector<4x128xf32>
    %6 = arith.mulf %4, %3 : vector<4x128xf32>
    %7 = arith.subf %5, %6 : vector<4x128xf32>
    %cst = arith.constant -1.000000e+02 : f32
    %8 = vector.broadcast %cst : f32 to vector<4x128xf32>
    %9 = arith.cmpf one, %4, %8 : vector<4x128xf32>
    %cst_4 = arith.constant 0.000000e+00 : f32
    %10 = vector.broadcast %cst_4 : f32 to vector<4x128xf32>
    %11 = arith.select %9, %7, %10 : vector<4x128xi1>, vector<4x128xf32>
    %12 = arith.extui %9 : vector<4x128xi1> to vector<4x128xi32>
    %13 = arith.sitofp %12 : vector<4x128xi32> to vector<4x128xf32>
    %c0_5 = arith.constant 0 : index
    %c0_6 = arith.constant 0 : index
    %14 = vector.load %arg6[%c0_5, %c0_6] : memref<8x128xf32, #tpu.memory_space<vmem>>, vector<1x128xf32>
    %cst_7 = arith.constant dense<0.000000e+00> : vector<128xf32>
    %15 = vector.multi_reduction <add>, %11, %cst_7 [0] : vector<4x128xf32> to vector<128xf32>
    %16 = vector.shape_cast %15 : vector<128xf32> to vector<1x128xf32>
    %17 = arith.addf %14, %16 : vector<1x128xf32>
    %c0_8 = arith.constant 0 : index
    %c0_9 = arith.constant 0 : index
    %18 = vector.load %arg6[%c0_8, %c0_9] : memref<8x128xf32, #tpu.memory_space<vmem>>, vector<1x128xf32>
    tpu.vector_store %arg6[%c0_8, %c0_9], %17 {strides = array<i32>} : memref<8x128xf32, #tpu.memory_space<vmem>>, vector<1x128xf32>,
    %c0_10 = arith.constant 0 : index
    %c0_11 = arith.constant 0 : index
    %19 = vector.load %arg7[%c0_10, %c0_11] : memref<8x128xf32, #tpu.memory_space<vmem>>, vector<1x128xf32>
    %cst_12 = arith.constant dense<0.000000e+00> : vector<128xf32>
    %20 = vector.multi_reduction <add>, %13, %cst_12 [0] : vector<4x128xf32> to vector<128xf32>
    %21 = vector.shape_cast %20 : vector<128xf32> to vector<1x128xf32>
    %22 = arith.addf %19, %21 : vector<1x128xf32>
    %c0_13 = arith.constant 0 : index
    %c0_14 = arith.constant 0 : index
    %23 = vector.load %arg7[%c0_13, %c0_14] : memref<8x128xf32, #tpu.memory_space<vmem>>, vector<1x128xf32>
    tpu.vector_store %arg7[%c0_13, %c0_14], %22 {strides = array<i32>} : memref<8x128xf32, #tpu.memory_space<vmem>>, vector<1x128xf32>,
    %c0_i32_15 = arith.constant 0 : i32
    %24 = arith.cmpi eq, %arg1, %c0_i32_15 : i32
    %25 = arith.extui %24 : i1 to i32
    %c0_i32_16 = arith.constant 0 : i32
    %26 = arith.cmpi ne, %25, %c0_i32_16 : i32
    scf.if %26 {
      %c0_17 = arith.constant 0 : index
      %c0_18 = arith.constant 0 : index
      %27 = vector.load %arg6[%c0_17, %c0_18] : memref<8x128xf32, #tpu.memory_space<vmem>>, vector<8x128xf32>
      %c0_19 = arith.constant 0 : index
      %c0_20 = arith.constant 0 : index
      %28 = vector.load %arg4[%c0_19, %c0_20] : memref<8x128xf32, #tpu.memory_space<vmem>>, vector<8x128xf32>
      tpu.vector_store %arg4[%c0_19, %c0_20], %27 {strides = array<i32>} : memref<8x128xf32, #tpu.memory_space<vmem>>, vector<8x128xf32>,
      %c0_21 = arith.constant 0 : index
      %c0_22 = arith.constant 0 : index
      %29 = vector.load %arg7[%c0_21, %c0_22] : memref<8x128xf32, #tpu.memory_space<vmem>>, vector<8x128xf32>
      %c0_23 = arith.constant 0 : index
      %c0_24 = arith.constant 0 : index
      %30 = vector.load %arg5[%c0_23, %c0_24] : memref<8x128xf32, #tpu.memory_space<vmem>>, vector<8x128xf32>
      tpu.vector_store %arg5[%c0_23, %c0_24], %29 {strides = array<i32>} : memref<8x128xf32, #tpu.memory_space<vmem>>, vector<8x128xf32>,
    } else {
    }
    return
  }
  func.func @transform_0(%arg0: i32, %arg1: i32) -> (i32, i32) {
    %c1_i32 = arith.constant 1 : i32
    %0 = arith.muli %arg0, %c1_i32 : i32
    %1 = arith.addi %0, %arg1 : i32
    %c0_i32 = arith.constant 0 : i32
    %2 = arith.minsi %1, %c0_i32 : i32
    %c0_i32_0 = arith.constant 0 : i32
    %c0_i32_1 = arith.constant 0 : i32
    return %2, %c0_i32_0 : i32, i32
  }
  func.func @transform_1(%arg0: i32, %arg1: i32) -> (i32, i32) {
    %c1_i32 = arith.constant 1 : i32
    %0 = arith.muli %arg0, %c1_i32 : i32
    %1 = arith.addi %0, %arg1 : i32
    %c0_i32 = arith.constant 0 : i32
    %2 = arith.minsi %1, %c0_i32 : i32
    %c0_i32_0 = arith.constant 0 : i32
    %c0_i32_1 = arith.constant 0 : i32
    return %2, %c0_i32_0 : i32, i32
  }
  func.func @transform_2(%arg0: i32, %arg1: i32) -> (i32, i32) {
    %c0_i32 = arith.constant 0 : i32
    %c0_i32_0 = arith.constant 0 : i32
    return %arg0, %c0_i32 : i32, i32
  }
  func.func @transform_3(%arg0: i32, %arg1: i32) -> (i32, i32) {
    %c0_i32 = arith.constant 0 : i32
    %c0_i32_0 = arith.constant 0 : i32
    return %arg0, %c0_i32 : i32, i32
  }
}

</mosaic_0001>

<bundles_post_ra>
// kernel: tpu_custom_call.1
= control target key start
LH: loop header
LB: loop body
LE: loop exit
PB: predicated region body
PF: predicated region fallthrough
CT: control target
= control target key end

     0   :  { %9 = vsyncpa [#allocation5], 0  ;;  %s312_s0 = inlined_call_operand.hbm [shape: f32[4,128], index: 0, kind: input, shape index: {}]   ;;  %s313_s1 = inlined_call_operand.hbm [shape: f32[4,128], index: 1, kind: input, shape index: {}]   ;;  %s314_s2 = inlined_call_operand.hbm [shape: f32[8,128], index: 2, kind: output, shape index: {0}]   ;;  %s315_s3 = inlined_call_operand.hbm [shape: f32[8,128], index: 3, kind: output, shape index: {1}]  }
   0x1   :  { %10 = vsyncpa [#allocation8], 0 }
   0x2   :  { %11 = vsyncpa [#allocation6], 0 }
   0x3   :  { %12 = vsyncpa [#allocation11], 0  ;;  %s237_s12 = smov [#allocation4]   ;;  %s238_s14 = smov [#allocation7]  }
   0x4   :  { %s24_s13 = sshll.u32 %s237_s12, 4  ;;  %s39_s15 = sshll.u32 %s238_s14, 4  ;;  %s25_s13 = int_to_ptr.vmem [resolvable:$true] %s24_s13  ;;  %s40_s15 = int_to_ptr.vmem [resolvable:$true] %s39_s15 }
   0x5   :  { %s141_s18 = scalar_lea.hbm %s312_s0, 64 }
   0x6   :  { %p142_p0 = scmp.ne.s32.totalorder %s312_s0, %s141_s18  ;;  %p145_p1 = scmp.lt.u32.totalorder %s141_s18, %s312_s0 }
   0x8   :  { %p147_p2 = pnand %p145_p1, %p142_p0 }
   0xa   :  { %150 = shalt.err (!%p147_p2)
}
   0xb   :  { %s151_s23 = scalar_lea.vmem %s25_s13, 64  ;;  %p156_p4 = scmp.lt.s32.totalorder %s25_s13, %s25_s13 }
   0xc   :  { %p152_p3 = scmp.ne.s32.totalorder %s25_s13, %s151_s23  ;;  %p157_p5 = scmp.lt.s32.totalorder %s151_s23, %s151_s23 }
   0xe   :  { %p158_p6 = por %p157_p5, %p156_p4 }
  0x10   :  { %p159_p7 = pnand %p158_p6, %p152_p3 }
  0x12   :  { %162 = shalt.err (!%p159_p7)
}
  0x13   :  { %27 = dma.hbm_to_vmem [thread:$0]  %s312_s0, 64, %s25_s13, [#allocation5]  }
  0x14   :  { %s163_s28 = scalar_lea.hbm %s313_s1, 64 }
  0x15   :  { %p164_p8 = scmp.ne.s32.totalorder %s313_s1, %s163_s28  ;;  %p167_p9 = scmp.lt.u32.totalorder %s163_s28, %s313_s1 }
  0x17   :  { %p169_p10 = pnand %p167_p9, %p164_p8 }
  0x19   :  { %172 = shalt.err (!%p169_p10)
}
  0x1a   :  { %s173_s6 = scalar_lea.vmem %s40_s15, 64  ;;  %p178_p12 = scmp.lt.s32.totalorder %s40_s15, %s40_s15 }
  0x1b   :  { %p174_p11 = scmp.ne.s32.totalorder %s40_s15, %s173_s6  ;;  %p179_p13 = scmp.lt.s32.totalorder %s173_s6, %s173_s6 }
  0x1d   :  { %p180_p0 = por %p179_p13, %p178_p12 }
  0x1f   :  { %p181_p1 = pnand %p180_p0, %p174_p11 }
  0x21   :  { %184 = shalt.err (!%p181_p1)
}
  0x22   :  { %42 = dma.hbm_to_vmem [thread:$0]  %s313_s1, 64, %s40_s15, [#allocation8]  }
  0x23   :  { %229 = dma.done.wait [#allocation5], 64  }
  0x24   :  { %230 = vsyncadd [#allocation5], 4294967232 }
  0x25   :  { %231 = dma.done.wait [#allocation8], 64  }
  0x26   :  { %232 = vsyncadd [#allocation8], 4294967232  ;;  %v239_v0 = vmov 0.0   ;;  %v61_v1 = vld [vmem:[#allocation4] sm:$0xf]  ;;  %vm72_vm0 = vcmask 1043456  }
  0x27   :  { %60 = vst [vmem:[#allocation3] sm:$0xff] %v239_v0  ;;  %59 = vst [vmem:[#allocation2] sm:$0xff] %v239_v0  ;;  %v62_v2 = vld [vmem:[#allocation7] sm:$0xf]  ;;  %v63_v3 = vmul.f32 1.442695, %v61_v1 }
  0x28   :  { %vm67_vm1 = vcmp.ne.f32.partialorder %v62_v2, -100.0  ;;  %v65_v9 = vmul.f32 %v62_v2, %v61_v1  ;;  %s240_s1 = smov [#allocation10]  }
  0x29   :  { %v133_v4 = vsel %vm67_vm1, 1.0, %v239_v0  ;;  %139 = vpow2.f32 %v63_v3  ;;  %s115_s8 = sshll.u32 %s240_s1, 4  ;;  %s116_s8 = int_to_ptr.vmem [resolvable:$true] %s115_s8 }
  0x2a   :  { %v83_v5 = vsel %vm72_vm0, %v133_v4, 0.0  ;;  %s185_s9 = scalar_lea.vmem %s116_s8, 128  ;;  %p190_p3 = scmp.lt.s32.totalorder %s116_s8, %s116_s8 }
  0x2b   :  { %v84_v6 = vrot.slane %v83_v5, 4  ;;  %p186_p2 = scmp.ne.s32.totalorder %s116_s8, %s185_s9  ;;  %p191_p4 = scmp.lt.s32.totalorder %s185_s9, %s185_s9 }
  0x2d   :  { %v85_v7 = vadd.f32 %v84_v6, %v83_v5  ;;  %p192_p5 = por %p191_p4, %p190_p3 }
  0x2e   :  { %v82_v13 = vld [vmem:[#allocation3] sm:$0x1]  ;;  %v71_v25 = vld [vmem:[#allocation2] sm:$0x1] }
  0x2f   :  { %v86_v8 = vrot.slane %v85_v7, 2  ;;  %p193_p6 = pnand %p192_p5, %p186_p2 }
  0x31   :  { %v87_v10 = vadd.f32 %v86_v8, %v85_v7 }
  0x33   :  { %v88_v11 = vrot.slane %v87_v10, 1  ;;  %v140_v12 = vpop.eup %139 }
  0x34   :  { %v66_v14 = vsub.f32 %v140_v12, %v65_v9 }
  0x35   :  { %v89_v15 = vadd.f32 %v88_v11, %v87_v10 }
  0x36   :  { %v68_v16 = vsel %vm67_vm1, %v66_v14, 0.0 }
  0x37   :  { %v90_v17 = vadd.f32 %v89_v15, %v82_v13  ;;  %v73_v18 = vsel %vm72_vm0, %v68_v16, 0.0 }
  0x38   :  { %v74_v19 = vrot.slane %v73_v18, 4 }
  0x39   :  { %91 = vst [vmem:[#allocation3] sm:$0x1] %v90_v17 }
  0x3a   :  { %v75_v20 = vadd.f32 %v74_v19, %v73_v18 }
  0x3c   :  { %v76_v21 = vrot.slane %v75_v20, 2 }
  0x3e   :  { %v77_v22 = vadd.f32 %v76_v21, %v75_v20 }
  0x40   :  { %v97_v23 = vld [vmem:[#allocation3] sm:$0xff]  ;;  %v78_v24 = vrot.slane %v77_v22, 1 }
  0x41   :  { %98 = vst [vmem:[#allocation10] sm:$0xff] %v97_v23 }
  0x42   :  { %196 = shalt.err (!%p193_p6)
}
  0x43   :  { %s197_s12 = scalar_lea.hbm %s315_s3, 128 }
  0x44   :  { %p198_p7 = scmp.ne.s32.totalorder %s315_s3, %s197_s12  ;;  %p201_p8 = scmp.lt.u32.totalorder %s197_s12, %s315_s3 }
  0x46   :  { %p203_p9 = pnand %p201_p8, %p198_p7 }
  0x48   :  { %206 = shalt.err (!%p203_p9)
}
  0x49   :  { %118 = dma.vmem_to_hbm [thread:$0]  %s116_s8, 128, %s315_s3, [#allocation11]   ;;  %v79_v26 = vadd.f32 %v78_v24, %v77_v22 }
  0x4a   :  { %s241_s19 = smov [#allocation9]  }
  0x4b   :  { %v80_v27 = vadd.f32 %v79_v26, %v71_v25  ;;  %s105_s20 = sshll.u32 %s241_s19, 4  ;;  %s106_s20 = int_to_ptr.vmem [resolvable:$true] %s105_s20 }
  0x4c   :  { %s207_s21 = scalar_lea.vmem %s106_s20, 128  ;;  %p212_p11 = scmp.lt.s32.totalorder %s106_s20, %s106_s20 }
  0x4d   :  { %81 = vst [vmem:[#allocation2] sm:$0x1] %v80_v27  ;;  %p208_p10 = scmp.ne.s32.totalorder %s106_s20, %s207_s21  ;;  %p213_p12 = scmp.lt.s32.totalorder %s207_s21, %s207_s21 }
  0x4f   :  { %p214_p13 = por %p213_p12, %p212_p11 }
  0x51   :  { %p215_p0 = pnand %p214_p13, %p208_p10 }
  0x54   :  { %v95_v28 = vld [vmem:[#allocation2] sm:$0xff] }
  0x55   :  { %96 = vst [vmem:[#allocation9] sm:$0xff] %v95_v28 }
  0x56   :  { %218 = shalt.err (!%p215_p0)
}
  0x57   :  { %s219_s24 = scalar_lea.hbm %s314_s2, 128 }
  0x58   :  { %p220_p1 = scmp.ne.s32.totalorder %s314_s2, %s219_s24  ;;  %p223_p2 = scmp.lt.u32.totalorder %s219_s24, %s314_s2 }
  0x5a   :  { %p225_p3 = pnand %p223_p2, %p220_p1 }
  0x5c   :  { %228 = shalt.err (!%p225_p3)
}
  0x5d   :  { %108 = dma.vmem_to_hbm [thread:$0]  %s106_s20, 128, %s314_s2, [#allocation6]  }
  0x5e   :  { %233 = dma.done.wait [#allocation6], 128  }
  0x5f   :  { %234 = vsyncadd [#allocation6], 4294967168 }
  0x60   :  { %235 = dma.done.wait [#allocation11], 128  }
  0x61   :  { %236 = vsyncadd [#allocation11], 4294967168 }
  0x62   :  { %125 = vsyncpa [#allocation5], 1 }
  0x63   :  { %126 = vsyncpa [#allocation8], 1 }
  0x64   :  { %127 = vsyncpa [#allocation6], 1 }
  0x65   :  { %128 = vsyncpa [#allocation11], 1 }

</bundles_post_ra>
